<compile_context>
chip_gen: v6e
topology: v6e:2x2x1
jax: 0.10.0
libtpu: 0.0.40
codegen_flags: <defaults>
</compile_context>

<pallas_src>
import functools
import math

import jax
import jax.numpy as jnp
from jax.experimental import pallas as pl
from jax.experimental.pallas import tpu as pltpu


# ---------------------------------------------------------------------------
# Helpers
# ---------------------------------------------------------------------------
def _round_up(x, m):
    return ((x + m - 1) // m) * m


def _sublane_multiple(dtype):
    # 8 rows per sublane group for 4-byte, 16 for 2-byte, 32 for 1-byte dtypes.
    itemsize = jnp.dtype(dtype).itemsize
    return max(8, 32 // max(1, itemsize))


def _vmem_capacity_bytes():
    try:
        return int(pltpu.get_tpu_info().vmem_capacity_bytes)
    except Exception:
        return 64 * 1024 * 1024  # conservative (v7x per-core VMEM)


def _choose_token_tile(n_tok, vocab_pad, dtype):
    """Token rows per grid step for the one-hot path."""
    sub = _sublane_multiple(dtype)
    itemsize = jnp.dtype(dtype).itemsize
    t = 256
    for cand in (1024, 512):
        # keep the in-kernel one-hot temporary modest (<= 8 MiB)
        if cand * vocab_pad * itemsize <= 8 * 1024 * 1024:
            t = cand
            break
    t = min(t, _round_up(n_tok, sub))  # never tile past the token count
    return max(sub, t)


def _onehot_vmem_estimate(n_tok, vocab_size, num_units, dtype):
    itemsize = jnp.dtype(dtype).itemsize
    vocab_pad = _round_up(vocab_size, 128)
    num_units_pad = _round_up(num_units, 128)
    t_tile = _choose_token_tile(n_tok, vocab_pad, dtype)
    table_bytes = vocab_pad * num_units_pad * itemsize            # single-buffered
    onehot_bytes = t_tile * vocab_pad * itemsize                  # in-kernel temp (once)
    acc_bytes = t_tile * num_units_pad * 4                        # f32 matmul result
    idx_bytes = 2 * t_tile * 128 * 4                              # (T,1) i32 block, 2 bufs
    out_bytes = 2 * t_tile * num_units_pad * itemsize             # output block, 2 bufs
    return table_bytes + onehot_bytes + acc_bytes + idx_bytes + out_bytes, t_tile


# ---------------------------------------------------------------------------
# Path A: table resident in VMEM, gather as one-hot matmul on the MXU.
# ---------------------------------------------------------------------------
def _onehot_gather_kernel(idx_ref, table_ref, out_ref, *, scale_factor):
    # idx_ref  : (T, 1) int32 token ids for this tile.
    # table_ref: (vocab_pad, num_units_pad) full lookup table (VMEM-resident, DMA'd once).
    # out_ref  : (T, num_units_pad) lane-dense output tile.
    t = idx_ref.shape[0]
    vocab_pad = table_ref.shape[0]

    iota = jax.lax.broadcasted_iota(jnp.int32, (t, vocab_pad), 1)
    onehot = (iota == idx_ref[...]).astype(table_ref.dtype)

    # f32 tables: force full-precision MXU passes so low mantissa bits are not dropped
    # relative to a true gather; bf16 tables use the native bf16 MXU path.
    prec = (jax.lax.Precision.HIGHEST
            if jnp.dtype(table_ref.dtype) == jnp.dtype(jnp.float32) else None)
    out = jnp.dot(onehot, table_ref[...],
                  preferred_element_type=jnp.float32, precision=prec)

    if scale_factor != 1.0:          # static config -> Python-level branch
        out = out * scale_factor
    out_ref[...] = out.astype(out_ref.dtype)


def _embedding_onehot(flat_idx, lookup_table, n_tok, batch, seq, scale_factor):
    vocab_size, num_units = lookup_table.shape
    itemsize = jnp.dtype(lookup_table.dtype).itemsize

    vocab_pad = _round_up(vocab_size, 128)
    num_units_pad = _round_up(num_units, 128)     # lane-dense output / dense MXU N
    est_vmem, t_tile = _onehot_vmem_estimate(n_tok, vocab_size, num_units,
                                             lookup_table.dtype)

    n_tok_pad = _round_up(n_tok, t_tile)
    n_blocks = n_tok_pad // t_tile

    # Pad token stream with index 0 (valid row; sliced off below); column layout so the
    # per-tile index block is (t_tile, 1) and broadcasts cheaply across lanes.
    idx_col = jnp.zeros((n_tok_pad, 1), jnp.int32).at[:n_tok, 0].set(flat_idx)

    # Pad the table: vocab rows to 128 (MXU K alignment), columns to 128 (lane-dense N).
    table_pad = lookup_table
    if (vocab_pad, num_units_pad) != lookup_table.shape:
        table_pad = jnp.pad(lookup_table,
                            ((0, vocab_pad - vocab_size),
                             (0, num_units_pad - num_units)))

    vmem_cap = _vmem_capacity_bytes()
    vmem_limit = int(min(vmem_cap - (8 << 20), max(32 << 20, est_vmem + (8 << 20))))

    kernel = functools.partial(_onehot_gather_kernel, scale_factor=scale_factor)

    out_flat = pl.pallas_call(
        kernel,
        grid=(n_blocks,),
        in_specs=[
            pl.BlockSpec((t_tile, 1), lambda i: (i, 0)),              # token ids tile
            pl.BlockSpec((vocab_pad, num_units_pad), lambda i: (0, 0),
                         pipeline_mode=pl.Buffered(1)),               # table, single buffer
        ],
        out_specs=pl.BlockSpec((t_tile, num_units_pad), lambda i: (i, 0)),
        out_shape=jax.ShapeDtypeStruct((n_tok_pad, num_units_pad), lookup_table.dtype),
        compiler_params=pltpu.CompilerParams(
            dimension_semantics=("parallel",),   # independent tokens -> both TCs on v7x
            vmem_limit_bytes=vmem_limit),
    )(idx_col, table_pad)

    return out_flat[:n_tok, :num_units].reshape(batch, seq, num_units)


# ---------------------------------------------------------------------------
# Path B (fallback): batched manual-DMA row gather, R rows per grid step.
# ---------------------------------------------------------------------------
def _gather_rows_kernel(idx_ref, table_hbm, out_ref, row_buf, sems, *,
                        rows_per_step, scale_factor):
    # idx_ref  : (n_tok_pad,) int32 in SMEM (scalar prefetch).
    # table_hbm: (vocab, num_units) table left in HBM (memory_space=pl.ANY).
    # out_ref  : (rows_per_step, num_units) output block.
    # row_buf  : (rows_per_step, num_units) VMEM scratch.
    # sems     : (rows_per_step,) DMA semaphores.
    base = pl.program_id(0) * rows_per_step

    # Read all row ids before any DMA wait (keeps SMEM sst->sld forwarding intact).
    row_ids = [idx_ref[base + r] for r in range(rows_per_step)]

    # Issue all row DMAs for this step; keeping them in flight together hides HBM latency.
    for r in range(rows_per_step):
        pltpu.make_async_copy(table_hbm.at[pl.ds(row_ids[r], 1), :],
                              row_buf.at[pl.ds(r, 1), :],
                              sems.at[r]).start()
    for r in range(rows_per_step):
        pltpu.make_async_copy(table_hbm.at[pl.ds(row_ids[r], 1), :],
                              row_buf.at[pl.ds(r, 1), :],
                              sems.at[r]).wait()

    vals = row_buf[...]
    if scale_factor != 1.0:
        vals = vals * scale_factor
    out_ref[...] = vals.astype(out_ref.dtype)


def _embedding_row_gather(flat_idx, lookup_table, n_tok, batch, seq, scale_factor):
    vocab_size, num_units = lookup_table.shape
    rows = max(16, _sublane_multiple(lookup_table.dtype))   # rows gathered per grid step

    n_tok_pad = _round_up(n_tok, rows)
    n_blocks = n_tok_pad // rows
    idx_pad = jnp.zeros((n_tok_pad,), jnp.int32).at[:n_tok].set(flat_idx)

    # TODO(synk): cross-step double-buffering of row_buf and lane-padding num_units to 128
    # could squeeze out a bit more on top of the per-step batched DMAs.
    kernel = functools.partial(_gather_rows_kernel, rows_per_step=rows,
                               scale_factor=scale_factor)
    grid_spec = pltpu.PrefetchScalarGridSpec(
        num_scalar_prefetch=1,                 # flat indices land in SMEM
        grid=(n_blocks,),
        in_specs=[pl.BlockSpec(memory_space=pl.ANY)],   # table stays in HBM
        out_specs=pl.BlockSpec((rows, num_units), lambda i, idx: (i, 0)),
        scratch_shapes=[pltpu.VMEM((rows, num_units), lookup_table.dtype),
                        pltpu.SemaphoreType.DMA((rows,))],
    )
    out_flat = pl.pallas_call(
        kernel,
        grid_spec=grid_spec,
        out_shape=jax.ShapeDtypeStruct((n_tok_pad, num_units), lookup_table.dtype),
        compiler_params=pltpu.CompilerParams(
            dimension_semantics=("parallel",)),   # independent blocks -> both TCs on v7x
    )(idx_pad, lookup_table)
    return out_flat[:n_tok].reshape(batch, seq, num_units)


# ---------------------------------------------------------------------------
# Public forward (matches Embedding.forward semantics).
# ---------------------------------------------------------------------------
def embedding_forward(indices, lookup_table, *, scale=False, force_path=None):
    """Pallas equivalent of Embedding.forward.

    indices      : int32 [batch, seq]
    lookup_table : float [vocab_size, num_units] (row 0 already zeroed if zeros_pad)
    returns      : [batch, seq, num_units]
    """
    batch, seq = indices.shape
    vocab_size, num_units = lookup_table.shape

    # Clamp so both paths agree and all DMAs stay in range (torch would raise on OOB).
    flat_idx = jnp.clip(indices.reshape(-1).astype(jnp.int32), 0, vocab_size - 1)
    n_tok = flat_idx.shape[0]

    # Scale is a static config -> bake into the kernel as a Python constant.
    scale_factor = float(num_units) ** 0.5 if scale else 1.0

    vocab_pad = _round_up(vocab_size, 128)
    num_units_pad = _round_up(num_units, 128)
    est_vmem, _ = _onehot_vmem_estimate(n_tok, vocab_size, num_units, lookup_table.dtype)
    budget = (_vmem_capacity_bytes() * 3) // 4   # ~96 MiB on v5e/v6e, ~48 MiB on v7x

    # When the vocab is much wider than the embedding, the one-hot build (~3 VALU ops per
    # token*vocab_pad element) dominates and a plain row gather is faster.
    # TODO(synk): a jnp.take gather on a VMEM-resident table would serve this regime best.
    valu_bound = vocab_pad > 8 * num_units_pad

    use_onehot = force_path == "onehot" or (
        force_path is None and est_vmem <= budget and not valu_bound)

    if use_onehot:
        return _embedding_onehot(flat_idx, lookup_table, n_tok, batch, seq, scale_factor)
    return _embedding_row_gather(flat_idx, lookup_table, n_tok, batch, seq, scale_factor)


def make_embedding_table(key, vocab_size, num_units, zeros_pad=True):
    """Deterministic xavier_normal_-style init (matches nn.init.xavier_normal_ stats)."""
    std = math.sqrt(2.0 / (vocab_size + num_units))
    table = std * jax.random.normal(key, (vocab_size, num_units), dtype=jnp.float32)
    if zeros_pad:
        # padding_idx=0 semantics: row 0 is zero, so index 0 embeds to zeros.
        table = table.at[0, :].set(0.0)
    return table


if __name__ == "__main__":
    vocab_size = 50
    num_units = 32
    batch, seq = 2, 8
    zeros_pad = True
    scale = True

    key = jax.random.PRNGKey(0)
    k_tab, k_idx = jax.random.split(key)

    lookup_table = make_embedding_table(k_tab, vocab_size, num_units, zeros_pad=zeros_pad)
    indices = jax.random.randint(k_idx, (batch, seq), minval=0, maxval=vocab_size,
                                 dtype=jnp.int32)
    indices = indices.at[0, 0].set(0)   # make sure the padding index appears

    # Pure-JAX reference of the PyTorch forward.
    ref = lookup_table[indices]
    if scale:
        ref = ref * (num_units ** 0.5)

    # Path A (resident table, one-hot MXU gather) — natural routing for this size.
    out_a = jax.block_until_ready(embedding_forward(indices, lookup_table, scale=scale))
    assert out_a.shape == (batch, seq, num_units)
    assert jnp.allclose(out_a, ref, atol=1e-5, rtol=1e-5)
    assert jnp.allclose(out_a[0, 0], jnp.zeros((num_units,)))   # zeros_pad row

    # Path B (batched manual-DMA row gather) — forced, to exercise the fallback.
    out_b = jax.block_until_ready(
        embedding_forward(indices, lookup_table, scale=scale, force_path="gather"))
    assert out_b.shape == (batch, seq, num_units)
    assert jnp.allclose(out_b, ref, atol=1e-5, rtol=1e-5)
    assert jnp.allclose(out_b[0, 0], jnp.zeros((num_units,)))

    print("KERNEL_OK")
</pallas_src>

<mosaic_0001>
module attributes {stable_mosaic.version = 11 : i64} {
  func.func @_onehot_gather_kernel(%arg0: i32, %arg1: memref<16x1xi32, #tpu.memory_space<vmem>>, %arg2: memref<128x128xf32, #tpu.memory_space<vmem>>, %arg3: memref<16x128xf32, #tpu.memory_space<vmem>>) attributes {dimension_semantics = [#tpu.dimension_semantics<parallel>], iteration_bounds = array<i64: 1>, scalar_prefetch = 0 : i64, scratch_operands = 0 : i64, tpu.core_type = #tpu.core_type<tc>, window_params = [{transform_indices = @transform_0, window_bounds = array<i64: 16, 1>}, {pipeline_mode = #tpu.pipeline_mode<synchronous>, transform_indices = @transform_1, window_bounds = array<i64: 128, 128>}, {transform_indices = @transform_2, window_bounds = array<i64: 16, 128>}]} {
    %0 = tpu.iota {dimensions = array<i32: 1>} : vector<16x128xi32>
    %c0 = arith.constant 0 : index
    %c0_0 = arith.constant 0 : index
    %1 = vector.load %arg1[%c0, %c0_0] : memref<16x1xi32, #tpu.memory_space<vmem>>, vector<16x1xi32>
    %2 = vector.broadcast %1 : vector<16x1xi32> to vector<16x128xi32>
    %3 = arith.cmpi eq, %0, %2 : vector<16x128xi32>
    %4 = arith.extui %3 : vector<16x128xi1> to vector<16x128xi32>
    %5 = arith.sitofp %4 : vector<16x128xi32> to vector<16x128xf32>
    %c0_1 = arith.constant 0 : index
    %c0_2 = arith.constant 0 : index
    %6 = vector.load %arg2[%c0_1, %c0_2] : memref<128x128xf32, #tpu.memory_space<vmem>>, vector<128x128xf32>
    %cst = arith.constant dense<0.000000e+00> : vector<16x128xf32>
    %7 = tpu.matmul %5, %6, %cst {dimension_numbers = #tpu.dot_dimension_numbers<[1], [0], [0], [1], [0, 0, 1, 1], [], []>, precision = #tpu.contract_precision<fp32>} : vector<16x128xf32>, vector<128x128xf32>, vector<16x128xf32> -> vector<16x128xf32>
    %cst_3 = arith.constant 5.65685415 : f32
    %8 = vector.broadcast %cst_3 : f32 to vector<16x128xf32>
    %9 = arith.mulf %7, %8 : vector<16x128xf32>
    %c0_4 = arith.constant 0 : index
    %c0_5 = arith.constant 0 : index
    %10 = vector.load %arg3[%c0_4, %c0_5] : memref<16x128xf32, #tpu.memory_space<vmem>>, vector<16x128xf32>
    tpu.vector_store %arg3[%c0_4, %c0_5], %9 {strides = array<i32>} : memref<16x128xf32, #tpu.memory_space<vmem>>, vector<16x128xf32>,
    return
  }
  func.func @transform_0(%arg0: i32) -> (i32, i32) {
    %c0_i32 = arith.constant 0 : i32
    %c0_i32_0 = arith.constant 0 : i32
    return %arg0, %c0_i32 : i32, i32
  }
  func.func @transform_1(%arg0: i32) -> (i32, i32) {
    %c0_i32 = arith.constant 0 : i32
    %c0_i32_0 = arith.constant 0 : i32
    %c0_i32_1 = arith.constant 0 : i32
    return %c0_i32, %c0_i32_0 : i32, i32
  }
  func.func @transform_2(%arg0: i32) -> (i32, i32) {
    %c0_i32 = arith.constant 0 : i32
    %c0_i32_0 = arith.constant 0 : i32
    return %arg0, %c0_i32 : i32, i32
  }
}

</mosaic_0001>

<bundles_post_ra>
// kernel: tpu_custom_call.1
= control target key start
LH: loop header
LB: loop body
LE: loop exit
PB: predicated region body
PF: predicated region fallthrough
CT: control target
= control target key end

     0   :  { %7 = vsyncpa [#allocation3], 0  ;;  %s1546_s0 = inlined_call_operand.vmem [shape: s32[16,1], index: 0, kind: input, shape index: {}]   ;;  %s1547_s1 = inlined_call_operand.hbm [shape: f32[128,128], index: 1, kind: input, shape index: {}]   ;;  %s1548_s2 = inlined_call_operand.hbm [shape: f32[16,128], index: 2, kind: output, shape index: {}]  }
   0x1   :  { %8 = vsyncpa [#allocation4], 0  ;;  %s1141_s9 = smov [#allocation2]  }
   0x2   :  { %s16_s10 = sshll.u32 %s1141_s9, 4  ;;  %s17_s10 = int_to_ptr.vmem [resolvable:$true] %s16_s10 }
   0x3   :  { %s1105_s11 = scalar_lea.vmem %s17_s10, 2048  ;;  %p1110_p1 = scmp.lt.s32.totalorder %s17_s10, %s17_s10 }
   0x4   :  { %p1106_p0 = scmp.ne.s32.totalorder %s17_s10, %s1105_s11  ;;  %p1111_p2 = scmp.lt.s32.totalorder %s1105_s11, %s1105_s11 }
   0x6   :  { %p1112_p3 = por %p1111_p2, %p1110_p1 }
   0x8   :  { %p1113_p4 = pnand %p1112_p3, %p1106_p0 }
   0xa   :  { %1116 = shalt.err (!%p1113_p4)
}
   0xb   :  { %s1142_s12 = smov 128   ;;  %s1143_s13 = smov 8  }
   0xc   :  { %22 = dma.hbm_to_vmem [thread:$0]  %s1547_s1, 2048, %s17_s10, [#allocation3], %s1142_s12, %s1142_s12, %s1143_s13  }
   0xd   :  { %1137 = dma.done.wait [#allocation3], 2048  }
   0xe   :  { %1138 = vsyncadd [#allocation3], 4294965248  ;;  %v1144_v0 = vmov 0   ;;  %v28_v1 = vld [vmem:[%s1546_s0] sm:$0xff]  ;;  %v29_v2 = vld [vmem:[%s1546_s0 + $0x8] sm:$0xff]  ;;  %s1147_s0 = smov [#allocation5]  }
   0xf   :  { %1096 = vset.pattern.permute.xlu0 %v1144_v0  ;;  %v57_v3 = vld [vmem:[#allocation2 + $0x78] sm:$0xff]  ;;  %v56_v5 = vld [vmem:[#allocation2 + $0x70] sm:$0xff]  ;;  %v55_v6 = vld [vmem:[#allocation2 + $0x68] sm:$0xff]  ;;  %s751_s1 = sshll.u32 %s1147_s0, 4  ;;  %s752_s1 = int_to_ptr.vmem [resolvable:$true] %s751_s1 }
  0x10   :  { %31 = vperm.xlu0 %1096, %v28_v1   ;;  %v1175_v4 = vand.u32 4294901760, %v57_v3  ;;  %v54_v7 = vld [vmem:[#allocation2 + $0x60] sm:$0xff]  ;;  %v1177_v8 = vand.u32 4294901760, %v56_v5  ;;  %v1179_v9 = vand.u32 4294901760, %v55_v6  ;;  %v53_v11 = vld [vmem:[#allocation2 + $0x58] sm:$0xff]  ;;  %v52_v12 = vld [vmem:[#allocation2 + $0x50] sm:$0xff]  ;;  %p1122_p6 = scmp.lt.s32.totalorder %s752_s1, %s752_s1 }
  0x11   :  { %v1181_v10 = vand.u32 4294901760, %v54_v7  ;;  %v51_v13 = vld [vmem:[#allocation2 + $0x48] sm:$0xff]  ;;  %v1186_v15 = vand.u32 4294901760, %v53_v11  ;;  %v1189_v16 = vand.u32 4294901760, %v52_v12  ;;  %v50_v18 = vld [vmem:[#allocation2 + $0x40] sm:$0xff]  ;;  %v49_v35 = vld [vmem:[#allocation2 + $0x38] sm:$0xff] }
  0x12   :  { %v1184_v14 = vsub.f32 %v57_v3, %v1175_v4  ;;  %879 = vmatprep.subr.mxu0 %v1175_v4  ;;  %v1191_v17 = vand.u32 4294901760, %v51_v13  ;;  %v1194_v19 = vsub.f32 %v56_v5, %v1177_v8  ;;  %v1197_v20 = vsub.f32 %v55_v6, %v1179_v9  ;;  %v48_v39 = vld [vmem:[#allocation2 + $0x30] sm:$0xff]  ;;  %v47_v40 = vld [vmem:[#allocation2 + $0x28] sm:$0xff]  ;;  %v46_v43 = vld [vmem:[#allocation2 + $0x20] sm:$0xff]  ;;  %s1117_s20 = scalar_lea.vmem %s752_s1, 256 }
  0x13   :  { %v1200_v21 = vsub.f32 %v54_v7, %v1181_v10  ;;  %880 = vmatpush3.msra.mxu0 %v1175_v4  ;;  %v1203_v22 = vand.u32 4294901760, %v50_v18  ;;  %v1209_v24 = vsub.f32 %v53_v11, %v1186_v15  ;;  %v1212_v25 = vsub.f32 %v52_v12, %v1189_v16  ;;  %v45_v50 = vld [vmem:[#allocation2 + $0x18] sm:$0xff]  ;;  %v44_v57 = vld [vmem:[#allocation2 + $0x10] sm:$0xff]  ;;  %v43_v63 = vld [vmem:[#allocation2 + $0x8] sm:$0xff]  ;;  %p1118_p5 = scmp.ne.s32.totalorder %s752_s1, %s1117_s20  ;;  %p1123_p7 = scmp.lt.s32.totalorder %s1117_s20, %s1117_s20 }
  0x14   :  { %34 = vperm.xlu0 %1096, %v29_v2   ;;  %v1206_v23 = vand.u32 4294901760, %v1184_v14  ;;  %881 = vmatprep.subr.mxu0 %v1177_v8  ;;  %v1216_v26 = vand.u32 4294901760, %v1194_v19  ;;  %v1219_v27 = vand.u32 4294901760, %v1197_v20  ;;  %v1226_v29 = vsub.f32 %v51_v13, %v1191_v17  ;;  %v42_v6 = vld [vmem:[#allocation2] sm:$0xff] }
  0x15   :  { %v1222_v28 = vand.u32 4294901760, %v1200_v21  ;;  %882 = vmatpush3.msra.mxu0 %v1177_v8  ;;  %v1231_v31 = vand.u32 4294901760, %v1209_v24  ;;  %v1240_v34 = vsub.f32 %v50_v18, %v1203_v22  ;;  %v1245_v38 = vand.u32 4294901760, %v1212_v25  ;;  %p1124_p8 = por %p1123_p7, %p1122_p6 }
  0x16   :  { %v163_v30 = vsub.f32 %v1184_v14, %v1206_v23  ;;  %883 = vmatprep.subr.mxu0 %v1179_v9  ;;  %v170_v32 = vsub.f32 %v1194_v19, %v1216_v26  ;;  %v177_v33 = vsub.f32 %v1197_v20, %v1219_v27  ;;  %v1249_v42 = vand.u32 4294901760, %v1226_v29 }
  0x17   :  { %884 = vmatpush3.msra.mxu0 %v1179_v9  ;;  %v184_v37 = vsub.f32 %v1200_v21, %v1222_v28  ;;  %v191_v45 = vsub.f32 %v1209_v24, %v1231_v31  ;;  %v1254_v46 = vand.u32 4294901760, %v49_v35  ;;  %v1258_v47 = vand.u32 4294901760, %v1240_v34  ;;  %p1125_p9 = pnand %p1124_p8, %p1118_p5 }
  0x18   :  { %v164_v36 = vand.u32 4294901760, %v163_v30  ;;  %885 = vmatprep.subr.mxu0 %v1181_v10  ;;  %v171_v41 = vand.u32 4294901760, %v170_v32  ;;  %v178_v44 = vand.u32 4294901760, %v177_v33  ;;  %v1261_v48 = vand.u32 4294901760, %v48_v39 }
  0x19   :  { %886 = vmatpush3.msra.mxu0 %v1181_v10  ;;  %v1263_v49 = vand.u32 4294901760, %v47_v40  ;;  %v185_v51 = vand.u32 4294901760, %v184_v37  ;;  %v198_v52 = vsub.f32 %v1212_v25, %v1245_v38  ;;  %v1268_v53 = vsub.f32 %v49_v35, %v1254_v46 }
  0x1a   :  { %914 = vmatprep.subr.mxu1 %v164_v36  ;;  %887 = vmatprep.subr.mxu0 %v1186_v15  ;;  %v1271_v54 = vand.u32 4294901760, %v46_v43  ;;  %v205_v55 = vsub.f32 %v1226_v29, %v1249_v42  ;;  %v1276_v56 = vsub.f32 %v48_v39, %v1261_v48  ;;  %v192_v58 = vand.u32 4294901760, %v191_v45 }
  0x1b   :  { %915 = vmatpush3.msra.mxu1 %v164_v36  ;;  %888 = vmatpush3.msra.mxu0 %v1186_v15  ;;  %v1280_v59 = vand.u32 4294901760, %v1268_v53  ;;  %v1283_v60 = vsub.f32 %v47_v40, %v1263_v49  ;;  %v1286_v61 = vand.u32 4294901760, %v45_v50  ;;  %v212_v62 = vsub.f32 %v1240_v34, %v1258_v47 }
  0x1c   :  { %916 = vmatprep.subr.mxu1 %v171_v41  ;;  %889 = vmatprep.subr.mxu0 %v1189_v16  ;;  %v199_v0 = vand.u32 4294901760, %v198_v52  ;;  %v1292_v1 = vand.u32 4294901760, %v1276_v56  ;;  %v1295_v2 = vsub.f32 %v46_v43, %v1271_v54  ;;  %v1298_v3 = vand.u32 4294901760, %v44_v57 }
  0x1d   :  { %917 = vmatpush3.msra.mxu1 %v171_v41  ;;  %890 = vmatpush3.msra.mxu0 %v1189_v16  ;;  %v206_v5 = vand.u32 4294901760, %v205_v55  ;;  %v219_v7 = vsub.f32 %v1268_v53, %v1280_v59  ;;  %v1304_v11 = vand.u32 4294901760, %v1283_v60  ;;  %v1307_v12 = vsub.f32 %v45_v50, %v1286_v61 }
  0x1e   :  { %918 = vmatprep.subr.mxu1 %v178_v44  ;;  %891 = vmatprep.subr.mxu0 %v1191_v17  ;;  %v1310_v13 = vand.u32 4294901760, %v43_v63  ;;  %v213_v18 = vand.u32 4294901760, %v212_v62  ;;  %v226_v30 = vsub.f32 %v1276_v56, %v1292_v1  ;;  %v1316_v32 = vand.u32 4294901760, %v1295_v2 }
  0x1f   :  { %919 = vmatpush3.msra.mxu1 %v178_v44  ;;  %892 = vmatpush3.msra.mxu0 %v1191_v17  ;;  %v1319_v33 = vsub.f32 %v44_v57, %v1298_v3  ;;  %v1322_v35 = vand.u32 4294901760, %v42_v6  ;;  %v220_v36 = vand.u32 4294901760, %v219_v7  ;;  %v233_v37 = vsub.f32 %v1283_v60, %v1304_v11 }
  0x20   :  { %920 = vmatprep.subr.mxu1 %v185_v51  ;;  %893 = vmatprep.subr.mxu0 %v1203_v22  ;;  %v1328_v39 = vand.u32 4294901760, %v1307_v12  ;;  %v1331_v40 = vsub.f32 %v43_v63, %v1310_v13  ;;  %v227_v41 = vand.u32 4294901760, %v226_v30  ;;  %v240_v43 = vsub.f32 %v1295_v2, %v1316_v32 }
  0x21   :  { %921 = vmatpush3.msra.mxu1 %v185_v51  ;;  %894 = vmatpush3.msra.mxu0 %v1203_v22  ;;  %v1338_v44 = vand.u32 4294901760, %v1319_v33  ;;  %v1341_v45 = vsub.f32 %v42_v6, %v1322_v35  ;;  %v234_v50 = vand.u32 4294901760, %v233_v37  ;;  %v1145_v37 = vmov 0.0  }
  0x22   :  { %922 = vmatprep.subr.mxu1 %v192_v58  ;;  %895 = vmatprep.subr.mxu0 %v1254_v46  ;;  %v247_v51 = vsub.f32 %v1307_v12, %v1328_v39  ;;  %v1348_v52 = vand.u32 4294901760, %v1331_v40  ;;  %v241_v55 = vand.u32 4294901760, %v240_v43  ;;  %v1146_v43 = vmov 1.0  }
  0x23   :  { %923 = vmatpush3.msra.mxu1 %v192_v58  ;;  %896 = vmatpush3.msra.mxu0 %v1254_v46  ;;  %v254_v57 = vsub.f32 %v1319_v33, %v1338_v44  ;;  %v1355_v58 = vand.u32 4294901760, %v1341_v45 }
  0x24   :  { %924 = vmatprep.subr.mxu1 %v199_v0  ;;  %897 = vmatprep.subr.mxu0 %v1261_v48  ;;  %v248_v62 = vand.u32 4294901760, %v247_v51  ;;  %v261_v63 = vsub.f32 %v1331_v40, %v1348_v52 }
  0x25   :  { %925 = vmatpush3.msra.mxu1 %v199_v0  ;;  %898 = vmatpush3.msra.mxu0 %v1261_v48  ;;  %v255_v0 = vand.u32 4294901760, %v254_v57 }
  0x26   :  { %926 = vmatprep.subr.mxu1 %v206_v5  ;;  %899 = vmatprep.subr.mxu0 %v1263_v49  ;;  %v262_v6 = vand.u32 4294901760, %v261_v63 }
  0x27   :  { %927 = vmatpush3.msra.mxu1 %v206_v5  ;;  %900 = vmatpush3.msra.mxu0 %v1263_v49  ;;  %v268_v5 = vsub.f32 %v1341_v45, %v1355_v58 }
  0x28   :  { %928 = vmatprep.subr.mxu1 %v213_v18  ;;  %901 = vmatprep.subr.mxu0 %v1271_v54 }
  0x29   :  { %929 = vmatpush3.msra.mxu1 %v213_v18  ;;  %902 = vmatpush3.msra.mxu0 %v1271_v54  ;;  %v269_v7 = vand.u32 4294901760, %v268_v5  ;;  %v26_v18 = vlaneseq }
  0x2a   :  { %930 = vmatprep.subr.mxu1 %v220_v36  ;;  %903 = vmatprep.subr.mxu0 %v1286_v61 }
  0x2b   :  { %931 = vmatpush3.msra.mxu1 %v220_v36  ;;  %904 = vmatpush3.msra.mxu0 %v1286_v61  ;;  %v1369_v30 = vand.u32 127, %v26_v18 }
  0x2c   :  { %932 = vmatprep.subr.mxu1 %v227_v41  ;;  %905 = vmatprep.subr.mxu0 %v1298_v3 }
  0x2d   :  { %933 = vmatpush3.msra.mxu1 %v227_v41  ;;  %906 = vmatpush3.msra.mxu0 %v1298_v3 }
  0x2e   :  { %934 = vmatprep.subr.mxu1 %v234_v50  ;;  %907 = vmatprep.subr.mxu0 %v1310_v13 }
  0x2f   :  { %935 = vmatpush3.msra.mxu1 %v234_v50  ;;  %908 = vmatpush3.msra.mxu0 %v1310_v13 }
  0x30   :  { %936 = vmatprep.subr.mxu1 %v241_v55  ;;  %909 = vmatprep.subr.mxu0 %v1322_v35 }
  0x31   :  { %937 = vmatpush3.msra.mxu1 %v241_v55  ;;  %910 = vmatpush3.msra.mxu0 %v1322_v35 }
  0x32   :  { %938 = vmatprep.subr.mxu1 %v248_v62  ;;  %949 = vmatprep.subr.mxu0 %v1184_v14 }
  0x33   :  { %939 = vmatpush3.msra.mxu1 %v248_v62 }
  0x34   :  { %940 = vmatprep.subr.mxu1 %v255_v0 }
  0x35   :  { %941 = vmatpush3.msra.mxu1 %v255_v0 }
  0x36   :  { %942 = vmatprep.subr.mxu1 %v262_v6 }
  0x37   :  { %943 = vmatpush3.msra.mxu1 %v262_v6 }
  0x38   :  { %944 = vmatprep.subr.mxu1 %v269_v7 }
  0x39   :  { %945 = vmatpush3.msra.mxu1 %v269_v7 }
  0x3a   :  { %984 = vmatprep.subr.mxu1 %v1175_v4 }
  0x8b   :  { %v1371_v36 = vpop.permute.xlu0 %31 }
  0x8c   :  { %vm36_vm0 = vcmp.eq.s32.totalorder %v1369_v30, %v1371_v36 }
  0x8d   :  { %v763_v41 = vsel %vm36_vm0, 1.0, %v1145_v37  ;;  %946 = vmatprep.mubr.msk.f32.mxu1 %vm36_vm0, %v1146_v43 }
  0x8e   :  { %v140_v50 = vsub.f32 %v763_v41, %v763_v41 }
  0x8f   :  { %v1382_v51 = vpop.permute.xlu0 %34 }
  0x90   :  { %vm37_vm1 = vcmp.eq.s32.totalorder %v1369_v30, %v1382_v51  ;;  %v141_v55 = vand.u32 4294901760, %v140_v50 }
  0x91   :  { %v764_v57 = vsel %vm37_vm1, 1.0, %v1145_v37  ;;  %947 = vmatmul.mubr.msk.f32.vlgmr.msra.gmra.mxu1 %vm37_vm1, %v1146_v43 }
  0x92   :  { %v1393_v62 = vsub.f32 %v764_v57, %v764_v57  ;;  %985 = vmatpush3.msra.mxu1 %v1175_v4  ;;  %1016 = vmatprep.mubr.f32.mxu1 %v141_v55  ;;  %v142_v63 = vsub.f32 %v140_v50, %v141_v55 }
  0x93   :  { %986 = vmatprep.subr.mxu1 %v1177_v8 }
  0x94   :  { %987 = vmatpush3.msra.mxu1 %v1177_v8  ;;  %v143_v0 = vand.u32 4294901760, %v142_v63  ;;  %v151_v5 = vand.u32 4294901760, %v1393_v62 }
  0x95   :  { %988 = vmatprep.subr.mxu1 %v1179_v9 }
  0x96   :  { %989 = vmatpush3.msra.mxu1 %v1179_v9  ;;  %911 = vmatprep.mubr.f32.mxu0 %v143_v0  ;;  %v152_v6 = vsub.f32 %v1393_v62, %v151_v5 }
  0x97   :  { %990 = vmatprep.subr.mxu1 %v1181_v10 }
  0x98   :  { %991 = vmatpush3.msra.mxu1 %v1181_v10  ;;  %v153_v7 = vand.u32 4294901760, %v152_v6 }
  0x99   :  { %992 = vmatprep.subr.mxu1 %v1186_v15 }
  0x9a   :  { %993 = vmatpush3.msra.mxu1 %v1186_v15  ;;  %912 = vmatmul.mubr.f32.vlgmr.msra.gmra.mxu0 %v153_v7 }
  0x9b   :  { %950 = vmatpush3.msra.mxu0 %v1184_v14  ;;  %994 = vmatprep.subr.mxu1 %v1189_v16 }
  0x9c   :  { %951 = vmatprep.subr.mxu0 %v1194_v19  ;;  %981 = vmatprep.mubr.f32.mxu0 %v140_v50 }
  0x9d   :  { %995 = vmatpush3.msra.mxu1 %v1189_v16  ;;  %952 = vmatpush3.msra.mxu0 %v1194_v19 }
  0x9e   :  { %996 = vmatprep.subr.mxu1 %v1191_v17  ;;  %953 = vmatprep.subr.mxu0 %v1197_v20 }
  0x9f   :  { %997 = vmatpush3.msra.mxu1 %v1191_v17  ;;  %954 = vmatpush3.msra.mxu0 %v1197_v20 }
  0xa0   :  { %998 = vmatprep.subr.mxu1 %v1203_v22  ;;  %955 = vmatprep.subr.mxu0 %v1200_v21 }
  0xa1   :  { %999 = vmatpush3.msra.mxu1 %v1203_v22  ;;  %956 = vmatpush3.msra.mxu0 %v1200_v21 }
  0xa2   :  { %1000 = vmatprep.subr.mxu1 %v1254_v46  ;;  %957 = vmatprep.subr.mxu0 %v1209_v24 }
  0xa3   :  { %1001 = vmatpush3.msra.mxu1 %v1254_v46  ;;  %958 = vmatpush3.msra.mxu0 %v1209_v24 }
  0xa4   :  { %1002 = vmatprep.subr.mxu1 %v1261_v48  ;;  %959 = vmatprep.subr.mxu0 %v1212_v25 }
  0xa5   :  { %1003 = vmatpush3.msra.mxu1 %v1261_v48  ;;  %960 = vmatpush3.msra.mxu0 %v1212_v25 }
  0xa6   :  { %1004 = vmatprep.subr.mxu1 %v1263_v49  ;;  %961 = vmatprep.subr.mxu0 %v1226_v29 }
  0xa7   :  { %1005 = vmatpush3.msra.mxu1 %v1263_v49  ;;  %962 = vmatpush3.msra.mxu0 %v1226_v29 }
  0xa8   :  { %1006 = vmatprep.subr.mxu1 %v1271_v54  ;;  %963 = vmatprep.subr.mxu0 %v1240_v34 }
  0xa9   :  { %1007 = vmatpush3.msra.mxu1 %v1271_v54  ;;  %964 = vmatpush3.msra.mxu0 %v1240_v34 }
  0xaa   :  { %1008 = vmatprep.subr.mxu1 %v1286_v61  ;;  %965 = vmatprep.subr.mxu0 %v1268_v53 }
  0xab   :  { %1009 = vmatpush3.msra.mxu1 %v1286_v61  ;;  %966 = vmatpush3.msra.mxu0 %v1268_v53 }
  0xac   :  { %1010 = vmatprep.subr.mxu1 %v1298_v3  ;;  %967 = vmatprep.subr.mxu0 %v1276_v56 }
  0xad   :  { %1011 = vmatpush3.msra.mxu1 %v1298_v3  ;;  %968 = vmatpush3.msra.mxu0 %v1276_v56 }
  0xae   :  { %1012 = vmatprep.subr.mxu1 %v1310_v13  ;;  %969 = vmatprep.subr.mxu0 %v1283_v60 }
  0xaf   :  { %1013 = vmatpush3.msra.mxu1 %v1310_v13  ;;  %970 = vmatpush3.msra.mxu0 %v1283_v60 }
  0xb0   :  { %1014 = vmatprep.subr.mxu1 %v1322_v35  ;;  %971 = vmatprep.subr.mxu0 %v1295_v2 }
  0xb1   :  { %1015 = vmatpush3.msra.mxu1 %v1322_v35  ;;  %972 = vmatpush3.msra.mxu0 %v1295_v2 }
  0xb2   :  { %1017 = vmatmul.mubr.f32.vlgmr.msra.gmra.mxu1 %v151_v5  ;;  %1054 = vmatprep.subr.mxu1 %v1175_v4 }
  0xb3   :  { %973 = vmatprep.subr.mxu0 %v1307_v12  ;;  %1055 = vmatpush3.msra.mxu1 %v1175_v4 }
  0xb4   :  { %1086 = vmatprep.mubr.msk.f32.mxu1 %vm36_vm0, %v1146_v43  ;;  %974 = vmatpush3.msra.mxu0 %v1307_v12 }
  0xb5   :  { %1056 = vmatprep.subr.mxu1 %v1177_v8  ;;  %975 = vmatprep.subr.mxu0 %v1319_v33 }
  0xb6   :  { %1057 = vmatpush3.msra.mxu1 %v1177_v8  ;;  %976 = vmatpush3.msra.mxu0 %v1319_v33 }
  0xb7   :  { %1058 = vmatprep.subr.mxu1 %v1179_v9  ;;  %977 = vmatprep.subr.mxu0 %v1331_v40 }
  0xb8   :  { %1059 = vmatpush3.msra.mxu1 %v1179_v9  ;;  %978 = vmatpush3.msra.mxu0 %v1331_v40 }
  0xb9   :  { %1060 = vmatprep.subr.mxu1 %v1181_v10  ;;  %979 = vmatprep.subr.mxu0 %v1341_v45 }
  0xba   :  { %1061 = vmatpush3.msra.mxu1 %v1181_v10  ;;  %980 = vmatpush3.msra.mxu0 %v1341_v45 }
  0xbb   :  { %1062 = vmatprep.subr.mxu1 %v1186_v15  ;;  %982 = vmatmul.mubr.f32.vlgmr.msra.gmra.mxu0 %v1393_v62 }
  0xbc   :  { %1019 = vmatprep.subr.mxu0 %v1206_v23  ;;  %1063 = vmatpush3.msra.mxu1 %v1186_v15 }
  0xbd   :  { %1020 = vmatpush3.msra.mxu0 %v1206_v23  ;;  %1051 = vmatprep.mubr.msk.f32.mxu0 %vm36_vm0, %v1146_v43 }
  0xbe   :  { %1064 = vmatprep.subr.mxu1 %v1189_v16  ;;  %1021 = vmatprep.subr.mxu0 %v1216_v26 }
  0xbf   :  { %1065 = vmatpush3.msra.mxu1 %v1189_v16  ;;  %1022 = vmatpush3.msra.mxu0 %v1216_v26 }
  0xc0   :  { %1066 = vmatprep.subr.mxu1 %v1191_v17  ;;  %1023 = vmatprep.subr.mxu0 %v1219_v27 }
  0xc1   :  { %1067 = vmatpush3.msra.mxu1 %v1191_v17  ;;  %1024 = vmatpush3.msra.mxu0 %v1219_v27 }
  0xc2   :  { %1068 = vmatprep.subr.mxu1 %v1203_v22  ;;  %1025 = vmatprep.subr.mxu0 %v1222_v28 }
  0xc3   :  { %1069 = vmatpush3.msra.mxu1 %v1203_v22  ;;  %1026 = vmatpush3.msra.mxu0 %v1222_v28 }
  0xc4   :  { %1070 = vmatprep.subr.mxu1 %v1254_v46  ;;  %1027 = vmatprep.subr.mxu0 %v1231_v31 }
  0xc5   :  { %1071 = vmatpush3.msra.mxu1 %v1254_v46  ;;  %1028 = vmatpush3.msra.mxu0 %v1231_v31 }
  0xc6   :  { %1072 = vmatprep.subr.mxu1 %v1261_v48  ;;  %1029 = vmatprep.subr.mxu0 %v1245_v38 }
  0xc7   :  { %1073 = vmatpush3.msra.mxu1 %v1261_v48  ;;  %1030 = vmatpush3.msra.mxu0 %v1245_v38 }
  0xc8   :  { %1074 = vmatprep.subr.mxu1 %v1263_v49  ;;  %1031 = vmatprep.subr.mxu0 %v1249_v42 }
  0xc9   :  { %1075 = vmatpush3.msra.mxu1 %v1263_v49  ;;  %1032 = vmatpush3.msra.mxu0 %v1249_v42 }
  0xca   :  { %1076 = vmatprep.subr.mxu1 %v1271_v54  ;;  %1033 = vmatprep.subr.mxu0 %v1258_v47 }
  0xcb   :  { %1077 = vmatpush3.msra.mxu1 %v1271_v54  ;;  %1034 = vmatpush3.msra.mxu0 %v1258_v47 }
  0xcc   :  { %1078 = vmatprep.subr.mxu1 %v1286_v61  ;;  %1035 = vmatprep.subr.mxu0 %v1280_v59 }
  0xcd   :  { %1079 = vmatpush3.msra.mxu1 %v1286_v61  ;;  %1036 = vmatpush3.msra.mxu0 %v1280_v59 }
  0xce   :  { %1080 = vmatprep.subr.mxu1 %v1298_v3  ;;  %1037 = vmatprep.subr.mxu0 %v1292_v1 }
  0xcf   :  { %1081 = vmatpush3.msra.mxu1 %v1298_v3  ;;  %1038 = vmatpush3.msra.mxu0 %v1292_v1 }
  0xd0   :  { %1082 = vmatprep.subr.mxu1 %v1310_v13  ;;  %1039 = vmatprep.subr.mxu0 %v1304_v11 }
  0xd1   :  { %1083 = vmatpush3.msra.mxu1 %v1310_v13  ;;  %1040 = vmatpush3.msra.mxu0 %v1304_v11 }
  0xd2   :  { %1084 = vmatprep.subr.mxu1 %v1322_v35  ;;  %1041 = vmatprep.subr.mxu0 %v1316_v32 }
  0xd3   :  { %1085 = vmatpush3.msra.mxu1 %v1322_v35  ;;  %1042 = vmatpush3.msra.mxu0 %v1316_v32 }
  0xd4   :  { %1087 = vmatmul.mubr.msk.f32.vlgmr.msra.gmra.mxu1 %vm37_vm1, %v1146_v43  ;;  %1043 = vmatprep.subr.mxu0 %v1328_v39 }
  0xd5   :  { %1044 = vmatpush3.msra.mxu0 %v1328_v39 }
  0xd6   :  { %1045 = vmatprep.subr.mxu0 %v1338_v44 }
  0xd7   :  { %1046 = vmatpush3.msra.mxu0 %v1338_v44 }
  0xd8   :  { %1047 = vmatprep.subr.mxu0 %v1348_v52 }
  0xd9   :  { %1048 = vmatpush3.msra.mxu0 %v1348_v52 }
  0xda   :  { %1049 = vmatprep.subr.mxu0 %v1355_v58 }
  0xdb   :  { %1050 = vmatpush3.msra.mxu0 %v1355_v58 }
  0xdc   :  { %1052 = vmatmul.mubr.msk.f32.vlgmr.msra.gmra.mxu0 %vm37_vm1, %v1146_v43 }
 0x151   :  { %v948_v8 = vpop.f32.mrf.mxu1 }
 0x153   :  { %v306_v14 = vpop.f32.mrf.mxu1 }
 0x15a   :  { %v913_v4 = vpop.f32.mrf.mxu0 }
 0x15b   :  { %v313_v15 = vadd.f32 %v948_v8, %v913_v4 }
 0x15c   :  { %v145_v9 = vpop.f32.mrf.mxu0 }
 0x15d   :  { %v307_v19 = vadd.f32 %v306_v14, %v145_v9 }
 0x172   :  { %v1018_v16 = vpop.f32.mrf.mxu1 }
 0x174   :  { %v512_v22 = vpop.f32.mrf.mxu1 }
 0x17b   :  { %v983_v10 = vpop.f32.mrf.mxu0 }
 0x17c   :  { %v424_v20 = vadd.f32 %v983_v10, %v313_v15 }
 0x17d   :  { %v416_v17 = vpop.f32.mrf.mxu0 }
 0x17e   :  { %v417_v21 = vadd.f32 %v416_v17, %v307_v19  ;;  %v521_v23 = vadd.f32 %v1018_v16, %v424_v20 }
 0x180   :  { %v513_v27 = vadd.f32 %v512_v22, %v417_v21 }
 0x194   :  { %v1088_v24 = vpop.f32.mrf.mxu1 }
 0x196   :  { %v732_v34 = vpop.f32.mrf.mxu1 }
 0x19c   :  { %v1053_v25 = vpop.f32.mrf.mxu0 }
 0x19d   :  { %v646_v26 = vadd.f32 %v1053_v25, %v521_v23 }
 0x19e   :  { %v639_v28 = vpop.f32.mrf.mxu0 }
 0x19f   :  { %v739_v29 = vadd.f32 %v1088_v24, %v646_v26  ;;  %v640_v31 = vadd.f32 %v639_v28, %v513_v27 }
 0x1a1   :  { %v743_v38 = vmul.f32 5.656854, %v739_v29  ;;  %v733_v42 = vadd.f32 %v732_v34, %v640_v31 }
 0x1a3   :  { %745 = vst [vmem:[#allocation5 + $0x8] sm:$0xff] %v743_v38  ;;  %v742_v46 = vmul.f32 5.656854, %v733_v42 }
 0x1a5   :  { %744 = vst [vmem:[#allocation5] sm:$0xff] %v742_v46 }
 0x1a6   :  { %1128 = shalt.err (!%p1125_p9)
}
 0x1a7   :  { %757 = dma.vmem_to_hbm [thread:$0]  %s752_s1, 256, %s1548_s2, [#allocation4], %s1142_s12, %s1142_s12, %s1143_s13  }
 0x1a8   :  { %1139 = dma.done.wait [#allocation4], 256  }
 0x1a9   :  { %1140 = vsyncadd [#allocation4], 4294967040 }
 0x1aa   :  { %761 = vsyncpa [#allocation3], 1 }
 0x1ab   :  { %762 = vsyncpa [#allocation4], 1 }

</bundles_post_ra>
